<compile_context>
chip_gen: v6e
topology: v6e:2x2x1
jax: 0.10.0
libtpu: 0.0.40
codegen_flags: <defaults>
</compile_context>

<pallas_src>
import functools

import numpy as np
import jax
import jax.numpy as jnp
from jax.experimental import pallas as pl
from jax.experimental.pallas import tpu as pltpu

HP = 128  # lane-padded hidden width (feedback: lane-dense output is the big lever)


# ----------------------------------------------------------------------------
# Pallas kernel 1: fused 2-layer GCN, batched over encoders (grid axis 0)
#   h1 = relu(Â @ (X @ W1) + b1)
#   h2 = relu(Â @ (h1 @ W2) + b2)
# ----------------------------------------------------------------------------
def _gcn2_kernel(a_ref, x_ref, w1_ref, b1_ref, w2_ref, b2_ref, o_ref):
    a = a_ref[...]
    h = jnp.dot(x_ref[...], w1_ref[...], preferred_element_type=jnp.float32)
    h = jnp.maximum(jnp.dot(a, h, preferred_element_type=jnp.float32)
                    + b1_ref[...], 0.0)
    h = jnp.dot(h, w2_ref[...], preferred_element_type=jnp.float32)
    o_ref[...] = jnp.maximum(jnp.dot(a, h, preferred_element_type=jnp.float32)
                             + b2_ref[...], 0.0)


def gcn2_batched(a_stack, x_stack, w1_stack, b1_stack, w2_stack, b2_stack):
    """a:[E,N,N] x:[E,N,F] w1:[E,F,HP] b1:[E,1,HP] w2:[E,HP,HP] b2:[E,1,HP]."""
    e, n, f = x_stack.shape
    return pl.pallas_call(
        _gcn2_kernel,
        out_shape=jax.ShapeDtypeStruct((e, n, HP), jnp.float32),
        grid=(e,),
        in_specs=[
            pl.BlockSpec((None, n, n), lambda i: (i, 0, 0)),
            pl.BlockSpec((None, n, f), lambda i: (i, 0, 0)),
            pl.BlockSpec((None, f, HP), lambda i: (i, 0, 0)),
            pl.BlockSpec((None, 1, HP), lambda i: (i, 0, 0)),
            pl.BlockSpec((None, HP, HP), lambda i: (i, 0, 0)),
            pl.BlockSpec((None, 1, HP), lambda i: (i, 0, 0)),
        ],
        out_specs=pl.BlockSpec((None, n, HP), lambda i: (i, 0, 0)),
        compiler_params=pltpu.CompilerParams(
            dimension_semantics=("parallel",)),
    )(a_stack, x_stack, w1_stack, b1_stack, w2_stack, b2_stack)


# ----------------------------------------------------------------------------
# Pallas kernel 2: batched MLP decoder heads on a shared input
#   y = (relu(x @ W1 + b1)) @ W2 + b2 ;  optional sigmoid per head (SMEM flag)
# Output is lane-dense [M, HP]; only column 0 is meaningful (sliced in wrapper).
# ----------------------------------------------------------------------------
def _mlp_heads_kernel(flags_ref, x_ref, w1_ref, b1_ref, w2_ref, b2_ref, o_ref):
    h = jnp.dot(x_ref[...], w1_ref[...], preferred_element_type=jnp.float32)
    h = jnp.maximum(h + b1_ref[...], 0.0)
    y = jnp.dot(h, w2_ref[...], preferred_element_type=jnp.float32) + b2_ref[...]
    use_sig = flags_ref[pl.program_id(0)] > 0
    o_ref[...] = jnp.where(use_sig, jax.nn.sigmoid(y), y)


def mlp_heads(x, w1_stack, b1_stack, w2_stack, b2_stack, sigmoid_flags):
    """x:[M,C] (C<=HP); stacks:[Hn,HP,HP]/[Hn,1,HP]; flags:[Hn] int32 -> [Hn,M]."""
    m, c = x.shape
    assert c <= HP
    nh = w1_stack.shape[0]
    mp = max(8, ((m + 7) // 8) * 8)
    x_pad = jnp.zeros((mp, HP), jnp.float32).at[:m, :c].set(x)

    gs = pltpu.PrefetchScalarGridSpec(
        num_scalar_prefetch=1,
        grid=(nh,),
        in_specs=[
            pl.BlockSpec((mp, HP), lambda e, flags: (0, 0)),
            pl.BlockSpec((None, HP, HP), lambda e, flags: (e, 0, 0)),
            pl.BlockSpec((None, 1, HP), lambda e, flags: (e, 0, 0)),
            pl.BlockSpec((None, HP, HP), lambda e, flags: (e, 0, 0)),
            pl.BlockSpec((None, 1, HP), lambda e, flags: (e, 0, 0)),
        ],
        out_specs=pl.BlockSpec((None, mp, HP), lambda e, flags: (e, 0, 0)),
    )
    out = pl.pallas_call(
        _mlp_heads_kernel,
        out_shape=jax.ShapeDtypeStruct((nh, mp, HP), jnp.float32),
        grid_spec=gs,
        compiler_params=pltpu.CompilerParams(
            dimension_semantics=("parallel",)),
    )(sigmoid_flags, x_pad, w1_stack, b1_stack, w2_stack, b2_stack)
    return out[:, :m, 0]


# ----------------------------------------------------------------------------
# Plain-JAX glue
# ----------------------------------------------------------------------------
def gcn_norm_dense(edge_index, edge_weight, num_nodes):
    """PyG-style gcn_norm -> dense Â = D^-1/2 (A + I) D^-1/2, Â[target, source]."""
    src, dst = edge_index[0], edge_index[1]
    loop = jnp.arange(num_nodes, dtype=src.dtype)
    src = jnp.concatenate([src, loop])
    dst = jnp.concatenate([dst, loop])
    ew = jnp.concatenate(
        [edge_weight, jnp.ones((num_nodes,), dtype=edge_weight.dtype)])
    deg = jnp.zeros((num_nodes,), dtype=ew.dtype).at[dst].add(ew)
    dinv = jnp.where(deg > 0, 1.0 / jnp.sqrt(deg), 0.0)
    norm = dinv[src] * ew * dinv[dst]
    return jnp.zeros((num_nodes, num_nodes), dtype=ew.dtype).at[dst, src].add(norm)


def _pad2(w, rows, cols):
    out = jnp.zeros((rows, cols), jnp.float32)
    return out.at[: w.shape[0], : w.shape[1]].set(w)


def _pad_bias(b):
    return _pad2(b.reshape(1, -1), 1, HP)


def _make_head_stack(heads):
    """heads: list of (w1 [c,d], b1 [d], w2 [d,1], b2 [1]) -> padded stacks."""
    w1 = jnp.stack([_pad2(h[0], HP, HP) for h in heads])
    b1 = jnp.stack([_pad_bias(h[1]) for h in heads])
    w2 = jnp.stack([_pad2(h[2], HP, HP) for h in heads])
    b2 = jnp.stack([_pad_bias(h[3]) for h in heads])
    return w1, b1, w2, b2


def global_mean_pool(x, batch):
    num_graphs = int(np.asarray(batch).max()) + 1
    sums = jnp.zeros((num_graphs, x.shape[1]), jnp.float32).at[batch].add(x)
    counts = jnp.zeros((num_graphs,), jnp.float32).at[batch].add(1.0)
    return sums / counts[:, None]


# ----------------------------------------------------------------------------
# Parameters (deterministic synthetic, glorot-style)
# ----------------------------------------------------------------------------
def init_joint_params(key, in_channels, h_obj, h_cons, d_hidden):
    def glorot(k, fi, fo):
        s = (6.0 / (fi + fo)) ** 0.5
        return jax.random.uniform(k, (fi, fo), jnp.float32, -s, s)

    def bias(k, n):
        return jax.random.uniform(k, (n,), jnp.float32, -0.1, 0.1)

    concat = h_obj + h_cons
    ks = jax.random.split(key, 24)
    return {
        # encoder_obj: GCNConv(4, h_obj), GCNConv(h_obj, h_obj)
        "obj_w1": glorot(ks[0], in_channels, h_obj), "obj_b1": bias(ks[1], h_obj),
        "obj_w2": glorot(ks[2], h_obj, h_obj), "obj_b2": bias(ks[3], h_obj),
        # encoder_cons: GCNConv(4, h_cons), GCNConv(h_cons, h_cons)
        "cons_w1": glorot(ks[4], in_channels, h_cons), "cons_b1": bias(ks[5], h_cons),
        "cons_w2": glorot(ks[6], h_cons, h_cons), "cons_b2": bias(ks[7], h_cons),
        # decoder_x
        "dx_w1": glorot(ks[8], concat, d_hidden), "dx_b1": bias(ks[9], d_hidden),
        "dx_w2": glorot(ks[10], d_hidden, 1), "dx_b2": bias(ks[11], 1),
        # decoder_cost
        "dc_w1": glorot(ks[12], concat, d_hidden), "dc_b1": bias(ks[13], d_hidden),
        "dc_w2": glorot(ks[14], d_hidden, 1), "dc_b2": bias(ks[15], 1),
        # decoder_constraints
        "dk_w1": glorot(ks[16], h_cons, d_hidden), "dk_b1": bias(ks[17], d_hidden),
        "dk_w2": glorot(ks[18], d_hidden, 1), "dk_b2": bias(ks[19], 1),
        # decoder_integrality
        "di_w1": glorot(ks[20], concat, d_hidden), "di_b1": bias(ks[21], d_hidden),
        "di_w2": glorot(ks[22], d_hidden, 1), "di_b2": bias(ks[23], 1),
    }


# ----------------------------------------------------------------------------
# JointGNN forward
# ----------------------------------------------------------------------------
def joint_gnn_forward(data_obj, data_feas, params):
    n, in_ch = data_obj["x"].shape
    h_obj_dim = params["obj_w1"].shape[1]
    h_cons_dim = params["cons_w1"].shape[1]

    # Nodes are laid out [variables; constraints] -> static slices (no gather).
    vmask = np.asarray(data_obj["variable_mask"])
    num_var = int(vmask.sum())
    assert vmask[:num_var].all() and not vmask[num_var:].any(), \
        "expected contiguous [variables; constraints] node layout"

    a_obj = gcn_norm_dense(data_obj["edge_index"], data_obj["edge_attr"], n)
    a_con = gcn_norm_dense(data_feas["edge_index"], data_feas["edge_attr"], n)

    # ---- batched 2-layer GCN (both encoders in one pallas_call) ----
    a_stack = jnp.stack([a_obj, a_con])
    x_stack = jnp.stack([data_obj["x"], data_feas["x"]])
    w1s = jnp.stack([_pad2(params["obj_w1"], in_ch, HP),
                     _pad2(params["cons_w1"], in_ch, HP)])
    b1s = jnp.stack([_pad_bias(params["obj_b1"]), _pad_bias(params["cons_b1"])])
    w2s = jnp.stack([_pad2(params["obj_w2"], HP, HP),
                     _pad2(params["cons_w2"], HP, HP)])
    b2s = jnp.stack([_pad_bias(params["obj_b2"]), _pad_bias(params["cons_b2"])])

    h = gcn2_batched(a_stack, x_stack, w1s, b1s, w2s, b2s)   # [2, N, HP]
    h_obj_nodes = h[0, :, :h_obj_dim]
    h_cons_nodes = h[1, :, :h_cons_dim]

    x_obj_var = h_obj_nodes[:num_var]
    x_cons_var = h_cons_nodes[:num_var]
    x_cons_constraints = h_cons_nodes[num_var:]
    x_var = jnp.concatenate([x_obj_var, x_cons_var], axis=1)  # [Nv, concat]

    # ---- decoder_x + decoder_integrality batched over one grid axis ----
    w1h, b1h, w2h, b2h = _make_head_stack([
        (params["dx_w1"], params["dx_b1"], params["dx_w2"], params["dx_b2"]),
        (params["di_w1"], params["di_b1"], params["di_w2"], params["di_b2"]),
    ])
    var_out = mlp_heads(x_var, w1h, b1h, w2h, b2h,
                        jnp.array([0, 1], jnp.int32))          # [2, Nv]
    x_hat = var_out[0]
    integrality_scores = var_out[1]

    # ---- cost head on globally-mean-pooled variable features ----
    batch = data_obj["batch"][:num_var]
    x_var_pooled = global_mean_pool(x_var, batch)
    w1c, b1c, w2c, b2c = _make_head_stack([
        (params["dc_w1"], params["dc_b1"], params["dc_w2"], params["dc_b2"])])
    predicted_cost = mlp_heads(x_var_pooled, w1c, b1c, w2c, b2c,
                               jnp.array([0], jnp.int32))[0].squeeze()

    # ---- constraints head on constraint nodes ----
    w1k, b1k, w2k, b2k = _make_head_stack([
        (params["dk_w1"], params["dk_b1"], params["dk_w2"], params["dk_b2"])])
    predicted_constraints = mlp_heads(x_cons_constraints, w1k, b1k, w2k, b2k,
                                      jnp.array([0], jnp.int32))[0]

    # ---- integrality gather (dynamic shape, eager boolean index) ----
    binary_mask_var = jnp.asarray(np.asarray(data_obj["binary_mask"])[:num_var])
    predicted_integrality = integrality_scores[binary_mask_var]

    return x_hat, predicted_cost, predicted_constraints, predicted_integrality


# ----------------------------------------------------------------------------
# Pure-JAX reference (unpadded math) for a sanity check
# ----------------------------------------------------------------------------
def _ref_forward(data_obj, data_feas, params):
    n = data_obj["x"].shape[0]
    vmask = np.asarray(data_obj["variable_mask"])
    num_var = int(vmask.sum())

    def gcn2(a, x, w1, b1, w2, b2):
        h = jnp.maximum(a @ (x @ w1) + b1, 0.0)
        return jnp.maximum(a @ (h @ w2) + b2, 0.0)

    def mlp(x, w1, b1, w2, b2):
        return jnp.maximum(x @ w1 + b1, 0.0) @ w2 + b2

    a_obj = gcn_norm_dense(data_obj["edge_index"], data_obj["edge_attr"], n)
    a_con = gcn_norm_dense(data_feas["edge_index"], data_feas["edge_attr"], n)
    h_obj = gcn2(a_obj, data_obj["x"], params["obj_w1"], params["obj_b1"],
                 params["obj_w2"], params["obj_b2"])
    h_con = gcn2(a_con, data_feas["x"], params["cons_w1"], params["cons_b1"],
                 params["cons_w2"], params["cons_b2"])

    x_var = jnp.concatenate([h_obj[:num_var], h_con[:num_var]], axis=1)
    x_cons_constraints = h_con[num_var:]

    x_hat = mlp(x_var, params["dx_w1"], params["dx_b1"],
                params["dx_w2"], params["dx_b2"]).squeeze()
    pooled = global_mean_pool(x_var, data_obj["batch"][:num_var])
    cost = mlp(pooled, params["dc_w1"], params["dc_b1"],
               params["dc_w2"], params["dc_b2"]).squeeze()
    cons = mlp(x_cons_constraints, params["dk_w1"], params["dk_b1"],
               params["dk_w2"], params["dk_b2"]).squeeze()
    integ = jax.nn.sigmoid(mlp(x_var, params["di_w1"], params["di_b1"],
                               params["di_w2"], params["di_b2"])).squeeze()
    bmask = jnp.asarray(np.asarray(data_obj["binary_mask"])[:num_var])
    return x_hat, cost, cons, integ[bmask]


# ----------------------------------------------------------------------------
# Example
# ----------------------------------------------------------------------------
def _make_graph(key, n_nodes, num_var, in_channels, n_edges):
    kx, ks, kd, kw = jax.random.split(key, 4)
    x = jax.random.normal(kx, (n_nodes, in_channels), jnp.float32)
    src_v = jax.random.randint(ks, (n_edges // 2,), 0, num_var)
    dst_c = jax.random.randint(kd, (n_edges // 2,), num_var, n_nodes)
    src = jnp.concatenate([src_v, dst_c]).astype(jnp.int32)
    dst = jnp.concatenate([dst_c, src_v]).astype(jnp.int32)
    edge_index = jnp.stack([src, dst], axis=0)
    edge_attr = jax.random.uniform(kw, (n_edges,), jnp.float32, 0.1, 1.0)
    return x, edge_index, edge_attr


if __name__ == "__main__":
    key = jax.random.PRNGKey(0)
    k_obj, k_feas, k_par = jax.random.split(key, 3)

    num_var, num_con = 8, 8
    n_nodes = num_var + num_con
    in_channels = 4          # GCNConv(4, H)
    hidden_obj = 32
    hidden_cons = 32
    decoder_hidden = 32
    n_edges = 40

    variable_mask = jnp.concatenate(
        [jnp.ones((num_var,), bool), jnp.zeros((num_con,), bool)])
    binary_mask = jnp.concatenate(
        [jnp.arange(num_var) % 2 == 0, jnp.zeros((num_con,), bool)])
    batch = jnp.zeros((n_nodes,), jnp.int32)   # single graph in the batch

    xo, eio, eao = _make_graph(k_obj, n_nodes, num_var, in_channels, n_edges)
    xf, eif, eaf = _make_graph(k_feas, n_nodes, num_var, in_channels, n_edges)

    data_obj = dict(x=xo, edge_index=eio, edge_attr=eao,
                    variable_mask=variable_mask, binary_mask=binary_mask,
                    batch=batch)
    data_feas = dict(x=xf, edge_index=eif, edge_attr=eaf,
                     variable_mask=variable_mask)

    params = init_joint_params(k_par, in_channels, hidden_obj, hidden_cons,
                               decoder_hidden)

    outs = joint_gnn_forward(data_obj, data_feas, params)
    jax.block_until_ready(outs)
    x_hat, predicted_cost, predicted_constraints, predicted_integrality = outs

    # sanity check against pure-JAX reference
    ref = _ref_forward(data_obj, data_feas, params)
    assert x_hat.shape == (num_var,)
    assert predicted_cost.shape == ()
    assert predicted_constraints.shape == (num_con,)
    assert predicted_integrality.shape == (int(np.asarray(binary_mask).sum()),)
    for got, want in zip(outs, ref):
        assert jnp.allclose(got, want, atol=5e-4, rtol=1e-4), (got, want)

    print("KERNEL_OK")
</pallas_src>

<mosaic_0001>
module attributes {stable_mosaic.version = 11 : i64} {
  func.func @_gcn2_kernel(%arg0: i32, %arg1: memref<1x16x16xf32, #tpu.memory_space<vmem>>, %arg2: memref<1x16x4xf32, #tpu.memory_space<vmem>>, %arg3: memref<1x4x128xf32, #tpu.memory_space<vmem>>, %arg4: memref<1x1x128xf32, #tpu.memory_space<vmem>>, %arg5: memref<1x128x128xf32, #tpu.memory_space<vmem>>, %arg6: memref<1x1x128xf32, #tpu.memory_space<vmem>>, %arg7: memref<1x16x128xf32, #tpu.memory_space<vmem>>) attributes {dimension_semantics = [#tpu.dimension_semantics<parallel>], iteration_bounds = array<i64: 2>, scalar_prefetch = 0 : i64, scratch_operands = 0 : i64, tpu.core_type = #tpu.core_type<tc>, window_params = [{transform_indices = @transform_0, window_bounds = array<i64: 1, 16, 16>}, {transform_indices = @transform_1, window_bounds = array<i64: 1, 16, 4>}, {transform_indices = @transform_2, window_bounds = array<i64: 1, 4, 128>}, {transform_indices = @transform_3, window_bounds = array<i64: 1, 1, 128>}, {transform_indices = @transform_4, window_bounds = array<i64: 1, 128, 128>}, {transform_indices = @transform_5, window_bounds = array<i64: 1, 1, 128>}, {transform_indices = @transform_6, window_bounds = array<i64: 1, 16, 128>}]} {
    %c0 = arith.constant 0 : index
    %c0_0 = arith.constant 0 : index
    %c0_1 = arith.constant 0 : index
    %0 = vector.load %arg1[%c0, %c0_0, %c0_1] : memref<1x16x16xf32, #tpu.memory_space<vmem>>, vector<1x16x16xf32>
    %1 = vector.shape_cast %0 : vector<1x16x16xf32> to vector<16x16xf32>
    %c0_2 = arith.constant 0 : index
    %c0_3 = arith.constant 0 : index
    %c0_4 = arith.constant 0 : index
    %2 = vector.load %arg2[%c0_2, %c0_3, %c0_4] : memref<1x16x4xf32, #tpu.memory_space<vmem>>, vector<1x16x4xf32>
    %3 = vector.shape_cast %2 : vector<1x16x4xf32> to vector<16x4xf32>
    %c0_5 = arith.constant 0 : index
    %c0_6 = arith.constant 0 : index
    %c0_7 = arith.constant 0 : index
    %4 = vector.load %arg3[%c0_5, %c0_6, %c0_7] : memref<1x4x128xf32, #tpu.memory_space<vmem>>, vector<1x4x128xf32>
    %5 = vector.shape_cast %4 : vector<1x4x128xf32> to vector<4x128xf32>
    %cst = arith.constant dense<0.000000e+00> : vector<16x128xf32>
    %6 = tpu.matmul %3, %5, %cst {dimension_numbers = #tpu.dot_dimension_numbers<[1], [0], [0], [1], [0, 0, 1, 1], [], []>} : vector<16x4xf32>, vector<4x128xf32>, vector<16x128xf32> -> vector<16x128xf32>
    %cst_8 = arith.constant dense<0.000000e+00> : vector<16x128xf32>
    %7 = tpu.matmul %1, %6, %cst_8 {dimension_numbers = #tpu.dot_dimension_numbers<[1], [0], [0], [1], [0, 0, 1, 1], [], []>} : vector<16x16xf32>, vector<16x128xf32>, vector<16x128xf32> -> vector<16x128xf32>
    %c0_9 = arith.constant 0 : index
    %c0_10 = arith.constant 0 : index
    %c0_11 = arith.constant 0 : index
    %8 = vector.load %arg4[%c0_9, %c0_10, %c0_11] : memref<1x1x128xf32, #tpu.memory_space<vmem>>, vector<1x1x128xf32>
    %9 = vector.shape_cast %8 : vector<1x1x128xf32> to vector<1x128xf32>
    %10 = vector.broadcast %9 : vector<1x128xf32> to vector<16x128xf32>
    %11 = arith.addf %7, %10 : vector<16x128xf32>
    %cst_12 = arith.constant 0.000000e+00 : f32
    %12 = vector.broadcast %cst_12 : f32 to vector<16x128xf32>
    %13 = arith.maximumf %11, %12 : vector<16x128xf32>
    %c0_13 = arith.constant 0 : index
    %c0_14 = arith.constant 0 : index
    %c0_15 = arith.constant 0 : index
    %14 = vector.load %arg5[%c0_13, %c0_14, %c0_15] : memref<1x128x128xf32, #tpu.memory_space<vmem>>, vector<1x128x128xf32>
    %15 = vector.shape_cast %14 : vector<1x128x128xf32> to vector<128x128xf32>
    %cst_16 = arith.constant dense<0.000000e+00> : vector<16x128xf32>
    %16 = tpu.matmul %13, %15, %cst_16 {dimension_numbers = #tpu.dot_dimension_numbers<[1], [0], [0], [1], [0, 0, 1, 1], [], []>} : vector<16x128xf32>, vector<128x128xf32>, vector<16x128xf32> -> vector<16x128xf32>
    %cst_17 = arith.constant dense<0.000000e+00> : vector<16x128xf32>
    %17 = tpu.matmul %1, %16, %cst_17 {dimension_numbers = #tpu.dot_dimension_numbers<[1], [0], [0], [1], [0, 0, 1, 1], [], []>} : vector<16x16xf32>, vector<16x128xf32>, vector<16x128xf32> -> vector<16x128xf32>
    %c0_18 = arith.constant 0 : index
    %c0_19 = arith.constant 0 : index
    %c0_20 = arith.constant 0 : index
    %18 = vector.load %arg6[%c0_18, %c0_19, %c0_20] : memref<1x1x128xf32, #tpu.memory_space<vmem>>, vector<1x1x128xf32>
    %19 = vector.shape_cast %18 : vector<1x1x128xf32> to vector<1x128xf32>
    %20 = vector.broadcast %19 : vector<1x128xf32> to vector<16x128xf32>
    %21 = arith.addf %17, %20 : vector<16x128xf32>
    %cst_21 = arith.constant 0.000000e+00 : f32
    %22 = vector.broadcast %cst_21 : f32 to vector<16x128xf32>
    %23 = arith.maximumf %21, %22 : vector<16x128xf32>
    %c0_22 = arith.constant 0 : index
    %c0_23 = arith.constant 0 : index
    %c0_24 = arith.constant 0 : index
    %24 = vector.load %arg7[%c0_22, %c0_23, %c0_24] : memref<1x16x128xf32, #tpu.memory_space<vmem>>, vector<1x16x128xf32>
    %25 = vector.shape_cast %24 : vector<1x16x128xf32> to vector<16x128xf32>
    %26 = vector.shape_cast %23 : vector<16x128xf32> to vector<1x16x128xf32>
    tpu.vector_store %arg7[%c0_22, %c0_23, %c0_24], %26 {strides = array<i32>} : memref<1x16x128xf32, #tpu.memory_space<vmem>>, vector<1x16x128xf32>,
    return
  }
  func.func @transform_0(%arg0: i32) -> (i32, i32, i32) {
    %c0_i32 = arith.constant 0 : i32
    %c0_i32_0 = arith.constant 0 : i32
    %c0_i32_1 = arith.constant 0 : i32
    return %arg0, %c0_i32, %c0_i32_0 : i32, i32, i32
  }
  func.func @transform_1(%arg0: i32) -> (i32, i32, i32) {
    %c0_i32 = arith.constant 0 : i32
    %c0_i32_0 = arith.constant 0 : i32
    %c0_i32_1 = arith.constant 0 : i32
    return %arg0, %c0_i32, %c0_i32_0 : i32, i32, i32
  }
  func.func @transform_2(%arg0: i32) -> (i32, i32, i32) {
    %c0_i32 = arith.constant 0 : i32
    %c0_i32_0 = arith.constant 0 : i32
    %c0_i32_1 = arith.constant 0 : i32
    return %arg0, %c0_i32, %c0_i32_0 : i32, i32, i32
  }
  func.func @transform_3(%arg0: i32) -> (i32, i32, i32) {
    %c0_i32 = arith.constant 0 : i32
    %c0_i32_0 = arith.constant 0 : i32
    %c0_i32_1 = arith.constant 0 : i32
    return %arg0, %c0_i32, %c0_i32_0 : i32, i32, i32
  }
  func.func @transform_4(%arg0: i32) -> (i32, i32, i32) {
    %c0_i32 = arith.constant 0 : i32
    %c0_i32_0 = arith.constant 0 : i32
    %c0_i32_1 = arith.constant 0 : i32
    return %arg0, %c0_i32, %c0_i32_0 : i32, i32, i32
  }
  func.func @transform_5(%arg0: i32) -> (i32, i32, i32) {
    %c0_i32 = arith.constant 0 : i32
    %c0_i32_0 = arith.constant 0 : i32
    %c0_i32_1 = arith.constant 0 : i32
    return %arg0, %c0_i32, %c0_i32_0 : i32, i32, i32
  }
  func.func @transform_6(%arg0: i32) -> (i32, i32, i32) {
    %c0_i32 = arith.constant 0 : i32
    %c0_i32_0 = arith.constant 0 : i32
    %c0_i32_1 = arith.constant 0 : i32
    return %arg0, %c0_i32, %c0_i32_0 : i32, i32, i32
  }
}

</mosaic_0001>

<bundles_post_ra>
// kernel: tpu_custom_call.1
= control target key start
LH: loop header
LB: loop body
LE: loop exit
PB: predicated region body
PF: predicated region fallthrough
CT: control target
= control target key end

     0   :  { %11 = vsyncpa [#allocation3], 0  ;;  %s1359_s0 = inlined_call_operand.vmem [shape: f32[2,16,16], index: 0, kind: input, shape index: {}]   ;;  %s1360_s1 = inlined_call_operand.vmem [shape: f32[2,16,4], index: 1, kind: input, shape index: {}]   ;;  %s1361_s2 = inlined_call_operand.vmem [shape: f32[2,4,128], index: 2, kind: input, shape index: {}]   ;;  %s1362_s3 = inlined_call_operand.vmem [shape: f32[2,1,128], index: 3, kind: input, shape index: {}]   ;;  %s1363_s4 = inlined_call_operand.hbm [shape: f32[2,128,128], index: 4, kind: input, shape index: {}]   ;;  %s1364_s5 = inlined_call_operand.vmem [shape: f32[2,1,128], index: 5, kind: input, shape index: {}]   ;;  %s1365_s6 = inlined_call_operand.hbm [shape: f32[2,16,128], index: 6, kind: output, shape index: {}]  }
   0x1   :  { %13 = vsyncpa [#allocation3 + $0x1], 0 }
   0x2   :  { %14 = vsyncpa [#allocation4], 0 }
   0x3   :  { %16 = vsyncpa [#allocation4 + $0x1], 0  ;;  %s1155_s21 = smov 0   ;;  %s1157_s22 = smov 0  }
   0x4   :  { %s1159_s23 = smov 0   ;;  %s1161_s24 = smov 0  }
   0x5 LB: > { %s1176_s25 = sadd.s32 4294967295, %s1112_s24   ;;  %s855_s26 = sadd.s32 4294967294, %s1112_s24   ;;  %s1112_s24 = sphi %s1161_s24, %s1380_s24   ;;  %s1108_s23 = sphi %s1159_s23, %s1379_s23   ;;  %s1104_s22 = sphi %s1157_s22, %s1378_s22   ;;  %s1100_s21 = sphi %s1155_s21, %s1377_s21  }
   0x6   : > { %s1180_s27 = sadd.s32 1, %s1112_s24   ;;  %s133_s28 = sadd.s32 1, %s1108_s23 }
   0x7   : > { %s130_s29 = ssub.s32 %s1112_s24, %s1180_s27  ;;  %p140_p0 = scmp.ne.s32.totalorder %s1108_s23, %s1104_s22 }
   0x8   : > { %p131_p1 = scmp.eq.s32.totalorder %s130_s29, 0  ;;  %p141_p2 = scmp.eq.s32.totalorder %s1112_s24, 0 }
   0x9   : > { %p146_p3 = scmp.ne.s32.totalorder %s1104_s22, %s1100_s21  ;;  %p147_p4 = scmp.eq.s32.totalorder %s1176_s25, 0 }
   0xa   : > { %s1192_s30 = scalar_select %p131_p1, %s1108_s23, %s133_s28  }
   0xb   : > { %p1194_p5 = por %p141_p2, %p140_p0  ;;  %p1198_p6 = por %p147_p4, %p146_p3 }
   0xc   : > { %p196_p7 = scmp.eq.s32.totalorder %s1176_s25, 1  ;;  %p202_p8 = scmp.eq.s32.totalorder %s855_s26, 1 }
   0xd   : > { %s1369_s8 = scalar_select %p1198_p6, 1, 0 }
   0xe   : > { %p982_p10 = scmp.lt.s32.totalorder %s1112_s24, 2  ;;  %p1205_p11 = por %p196_p7, %p140_p0 }
   0xf   : > { %p1209_p12 = por %p202_p8, %p146_p3  ;;  %s251_s11 = sand.u32 1, %s1108_s23  }
  0x10   : > { %s1370_s9 = scalar_select %p1205_p11, 1, 0 }
  0x11   : > { %s1371_s10 = scalar_select %p1209_p12, 1, 0 }
  0x12   : > { %s883_s12 = sshll.u32 %s1112_s24, 11  ;;  %s858_s13 = sshll.u32 %s251_s11, 7 }
  0x13   : > { %s1218_s16 = scalar_lea.hbm %s1363_s4, %s883_s12  ;;  %s255_s17 = scalar_lea.vmem [#allocation2], %s858_s13 }
  0x14   : > { %s262_s18 = sshll.u32 %s255_s17, 4  ;;  %p1222_p13 = pnand %p982_p10, %p1194_p5  ;;  %s1226_s18 = int_to_ptr.vmem [resolvable:$true] %s262_s18 }
  0x15   : > { %s1228_s20 = scalar_lea.sflag [#allocation3], %s251_s11  ;;  %s1020_s26 = scalar_lea.hbm %s1218_s16, 2048 }
  0x16   : > { %p1021_p0 = scmp.ne.s32.totalorder %s1218_s16, %s1020_s26  ;;  %p1022_p1 = pneg %p1222_p13 }
  0x17   : > { %s1025_s12 = scalar_lea.hbm %s1363_s4, 4096  ;;  %p1026_p4 = scmp.lt.s32.totalorder %s1218_s16, %s1363_s4 }
  0x18   : > { %p1023_p2 = pnand %p1022_p1, %p1021_p0  ;;  %p1027_p5 = scmp.lt.s32.totalorder %s1025_s12, %s1020_s26 }
  0x1a   : > { %p1024_p3 = pneg %p1023_p2  ;;  %p1028_p7 = por %p1027_p5, %p1026_p4 }
  0x1c   : > { %p1029_p8 = pnand %p1028_p7, %p1024_p3 }
  0x1e   : > { %1032 = shalt.err (!%p1029_p8)
}
  0x1f   : > { %s1033_s11 = scalar_lea.vmem %s1226_s18, 2048  ;;  %s1114_s14 = smov [#allocation2]  }
  0x20   : > { %p1034_p10 = scmp.ne.s32.totalorder %s1226_s18, %s1033_s11  ;;  %s1038_s15 = sshll.u32 %s1114_s14, 4  ;;  %s1039_s15 = int_to_ptr.vmem [resolvable:$false] %s1038_s15 }
  0x21   : > { %s1040_s17 = scalar_lea.vmem %s1039_s15, 4096  ;;  %p1041_p2 = scmp.lt.s32.totalorder %s1226_s18, %s1039_s15 }
  0x22   : > { %p1036_p9 = pnand %p1034_p10, %p1022_p1  ;;  %p1042_p12 = scmp.lt.s32.totalorder %s1040_s17, %s1033_s11 }
  0x24   : > { %p1037_p0 = pneg %p1036_p9  ;;  %p1043_p11 = por %p1042_p12, %p1041_p2 }
  0x26   : > { %p1044_p6 = pnand %p1043_p11, %p1037_p0 }
  0x28   : > { %1047 = shalt.err (!%p1044_p6)
}
  0x29   : > { %s1115_s26 = smov 128   ;;  %s1116_s28 = smov 8  }
  0x2a   : > { %977 = dma.hbm_to_vmem [thread:$0]  (!%p1222_p13), %s1218_s16, 2048, %s1226_s18, %s1228_s20, %s1115_s26, %s1115_s26, %s1116_s28  }
  0x2b   : > { %p861_p9 = scmp.ge.s32.totalorder %s1112_s24, 1  ;;  %p276_p1 = scmp.lt.s32.totalorder %s1112_s24, 3 }
  0x2d   : > { %p277_p3 = pnand %p861_p9, %p276_p1 }
  0x2e   : > { %s1252_s29 = sand.u32 (!%p277_p3), 1, %s1104_s22   ;;  %p1373_p6 = scmp.ne.s32.totalorder (!%p277_p3), %s1369_s8, 0 }
  0x2f   : > { %280 = sbr.rel (%p277_p3) target bundleno = 869 (0x365), region = 44  ;;  %s862_s12 = sshll.u32 (!%p277_p3), %s1252_s29, 7 }
  0x30   : > { %s283_s7 = scalar_lea.sflag (!%p277_p3), [#allocation3], %s1252_s29  ;;  %s1256_s13 = scalar_lea.vmem (!%p277_p3), [#allocation2], %s862_s12 }
  0x34   : > { %1091 = dma.done.wait (%p1373_p6), %s283_s7, 2048  }
  0x35   : > { %1093 = vsyncadd (%p1373_p6), %s283_s7, 4294965248  ;;  %p335_p11 = scmp.lt.s32.totalorder %s1176_s25, 1  ;;  %vm367_vm0 = vcmask 1043456   ;;  %vm360_vm1 = vcmask 31744   ;;  %vm453_vm2 = vcmask 130048   ;;  %v552_v4 = vld [vmem:[%s1256_s13 + $0x78] sm:$0xff] }
  0x36   : > { %v551_v5 = vld [vmem:[%s1256_s13 + $0x70] sm:$0xff]  ;;  %928 = vmatprep.subr.mxu0 %v552_v4  ;;  %v550_v6 = vld [vmem:[%s1256_s13 + $0x68] sm:$0xff]  ;;  %v549_v7 = vld [vmem:[%s1256_s13 + $0x60] sm:$0xff]  ;;  %p1374_p13 = scmp.ne.s32.totalorder %s1370_s9, 0 }
  0x37   : > { %s1264_s16 = scalar_select %p335_p11, %s1176_s25, 1  ;;  %929 = vmatpush3.msra.mxu0 %v552_v4  ;;  %v548_v8 = vld [vmem:[%s1256_s13 + $0x58] sm:$0xff]  ;;  %v547_v9 = vld [vmem:[%s1256_s13 + $0x50] sm:$0xff]  ;;  %v546_v10 = vld [vmem:[%s1256_s13 + $0x48] sm:$0xff] }
  0x38   : > { %930 = vmatprep.subr.mxu0 %v551_v5  ;;  %v545_v11 = vld [vmem:[%s1256_s13 + $0x40] sm:$0xff]  ;;  %v544_v12 = vld [vmem:[%s1256_s13 + $0x38] sm:$0xff]  ;;  %v543_v13 = vld [vmem:[%s1256_s13 + $0x30] sm:$0xff] }
  0x39   : > { %s868_s18 = sshll.u32 %s1264_s16, 2  ;;  %s884_s19 = sshll.u32 %s1264_s16, 4  ;;  %931 = vmatpush3.msra.mxu0 %v551_v5  ;;  %v542_v14 = vld [vmem:[%s1256_s13 + $0x28] sm:$0xff]  ;;  %v541_v15 = vld [vmem:[%s1256_s13 + $0x20] sm:$0xff]  ;;  %v540_v19 = vld [vmem:[%s1256_s13 + $0x18] sm:$0xff] }
  0x3a   : > { %s348_s14 = scalar_lea.vmem %s1361_s2, %s868_s18  ;;  %s344_s17 = scalar_lea.vmem %s1360_s1, %s884_s19  ;;  %932 = vmatprep.subr.mxu0 %v550_v6  ;;  %v539_v20 = vld [vmem:[%s1256_s13 + $0x10] sm:$0xff]  ;;  %v538_v21 = vld [vmem:[%s1256_s13 + $0x8] sm:$0xff]  ;;  %v537_v22 = vld [vmem:[%s1256_s13] sm:$0xff] }
  0x3b   : > { %v359_v0 = vld [vmem:[%s348_s14] sm:$0xf]  ;;  %v358_v2 = vld [vmem:[%s344_s17 + $0x8] sm:$0xff]  ;;  %s1277_s12 = scalar_lea.vmem %s1359_s0, %s884_s19  ;;  %933 = vmatpush3.msra.mxu0 %v550_v6  ;;  %s351_s19 = scalar_lea.vmem %s1362_s3, %s1264_s16 }
  0x3c   : > { %v357_v1 = vld [vmem:[%s344_s17] sm:$0xff]  ;;  %916 = vmatprep.subr.msk.mxu1 %vm367_vm0, %v359_v0  ;;  %934 = vmatprep.subr.mxu0 %v549_v7  ;;  %v356_v17 = vld [vmem:[%s1277_s12 + $0x8] sm:$0xff]  ;;  %s863_s13 = sshll.u32 %s1252_s29, 4  ;;  %s354_s14 = scalar_lea.vmem %s1364_s5, %s1264_s16 }
  0x3d   : > { %918 = vmatprep.mubr.msk.f32.mxu1 %vm360_vm1, %v357_v1  ;;  %917 = vmatpush3.msk.msra.mxu1 %vm367_vm0, %v359_v0  ;;  %v355_v3 = vld [vmem:[%s1277_s12] sm:$0xff]  ;;  %s334_s15 = scalar_lea.vmem [#allocation5], %s863_s13  ;;  %s886_s17 = sshll.u32 %s1176_s25, 8 }
  0x3e   : > { %919 = vmatmul.mubr.msk.f32.vlgmr.msra.gmra.mxu1 %vm360_vm1, %v358_v2  ;;  %935 = vmatpush3.msra.mxu0 %v549_v7  ;;  %v872_v23 = vld [vmem:[%s351_s19] ss:$0 sm:$0xff]  ;;  %s728_s8 = sshll.u32 %s334_s15, 4  ;;  %s1316_s12 = scalar_lea.hbm %s1365_s6, %s886_s17  ;;  %s1311_s8 = int_to_ptr.vmem [resolvable:$true] %s728_s8 }
  0x3f   : > { %925 = vmatprep.mubr.msk.f32.mxu1 %vm453_vm2, %v355_v3  ;;  %936 = vmatprep.subr.mxu0 %v548_v8  ;;  %v875_v32 = vld [vmem:[%s354_s14] ss:$0 sm:$0xff]  ;;  %s715_s16 = scalar_lea.sflag [#allocation4], %s1252_s29  ;;  %s1048_s7 = scalar_lea.vmem %s1311_s8, 256 }
  0x40   : > { %937 = vmatpush3.msra.mxu0 %v548_v8  ;;  %p1049_p12 = scmp.ne.s32.totalorder %s1311_s8, %s1048_s7  ;;  %s1117_s25 = smov [#allocation5]  }
  0x41   : > { %938 = vmatprep.subr.mxu0 %v547_v9  ;;  %s1052_s18 = sshll.u32 %s1117_s25, 4  ;;  %s1053_s18 = int_to_ptr.vmem [resolvable:$false] %s1052_s18 }
  0x42   : > { %939 = vmatpush3.msra.mxu0 %v547_v9  ;;  %p1050_p4 = pnand %p1049_p12, %p1374_p13  ;;  %s1054_s19 = scalar_lea.vmem %s1053_s18, 512 }
  0x43   : > { %940 = vmatprep.subr.mxu0 %v546_v10  ;;  %p1055_p7 = scmp.lt.s32.totalorder %s1311_s8, %s1053_s18  ;;  %p1056_p8 = scmp.lt.s32.totalorder %s1054_s19, %s1048_s7 }
  0x44   : > { %941 = vmatpush3.msra.mxu0 %v546_v10  ;;  %p1051_p5 = pneg %p1050_p4 }
  0x45   : > { %942 = vmatprep.subr.mxu0 %v545_v11  ;;  %p1057_p10 = por %p1056_p8, %p1055_p7 }
  0x46   : > { %943 = vmatpush3.msra.mxu0 %v545_v11 }
  0x47   : > { %944 = vmatprep.subr.mxu0 %v544_v12  ;;  %p1058_p0 = pnand %p1057_p10, %p1051_p5 }
  0x48   : > { %945 = vmatpush3.msra.mxu0 %v544_v12 }
  0x49   : > { %946 = vmatprep.subr.mxu0 %v543_v13 }
  0x4a   : > { %947 = vmatpush3.msra.mxu0 %v543_v13 }
  0x4b   : > { %948 = vmatprep.subr.mxu0 %v542_v14 }
  0x4c   : > { %949 = vmatpush3.msra.mxu0 %v542_v14 }
  0x4d   : > { %950 = vmatprep.subr.mxu0 %v541_v15 }
  0x4e   : > { %951 = vmatpush3.msra.mxu0 %v541_v15 }
  0x4f   : > { %952 = vmatprep.subr.mxu0 %v540_v19 }
  0x50   : > { %953 = vmatpush3.msra.mxu0 %v540_v19 }
  0x51   : > { %954 = vmatprep.subr.mxu0 %v539_v20 }
  0x52   : > { %955 = vmatpush3.msra.mxu0 %v539_v20 }
  0x53   : > { %956 = vmatprep.subr.mxu0 %v538_v21 }
  0x54   : > { %957 = vmatpush3.msra.mxu0 %v538_v21 }
  0x55   : > { %958 = vmatprep.subr.mxu0 %v537_v22 }
  0x56   : > { %959 = vmatpush3.msra.mxu0 %v537_v22 }
  0xfe   : > { %v920_v16 = vpop.f32.mrf.mxu1 }
  0xff   : > { %921 = vmatprep.subr.mxu1 %v920_v16 }
 0x100   : > { %v437_v18 = vpop.f32.mrf.mxu1  ;;  %922 = vmatpush3.msra.mxu1 %v920_v16 }
 0x101   : > { %923 = vmatprep.subr.mxu1 %v437_v18 }
 0x102   : > { %924 = vmatpush3.msra.mxu1 %v437_v18 }
 0x103   : > { %926 = vmatmul.mubr.msk.f32.vlgmr.msra.gmra.mxu1 %vm453_vm2, %v356_v17 }
 0x104   : > { %967 = vmatprep.mubr.msk.f32.mxu1 %vm453_vm2, %v355_v3 }
 0x1c3   : > { %v927_v24 = vpop.f32.mrf.mxu1 }
 0x1c4   : > { %v532_v25 = vadd.f32 %v927_v24, %v872_v23 }
 0x1c5   : > { %v526_v26 = vpop.f32.mrf.mxu1 }
 0x1c6   : > { %v527_v27 = vadd.f32 %v872_v23, %v526_v26  ;;  %v536_v29 = vmax.f32 %v532_v25, 0.0 }
 0x1c8   : > { %v535_v28 = vmax.f32 %v527_v27, 0.0 }
 0x1ca   : > { %960 = vmatprep.mubr.f32.mxu0 %v535_v28 }
 0x1cb   : > { %961 = vmatmul.mubr.f32.vlgmr.msra.gmra.mxu0 %v536_v29 }
 0x28b   : > { %v962_v30 = vpop.f32.mrf.mxu0 }
 0x28c   : > { %963 = vmatprep.subr.mxu1 %v962_v30 }
 0x28d   : > { %v619_v31 = vpop.f32.mrf.mxu0  ;;  %964 = vmatpush3.msra.mxu1 %v962_v30 }
 0x28e   : > { %965 = vmatprep.subr.mxu1 %v619_v31 }
 0x28f   : > { %966 = vmatpush3.msra.mxu1 %v619_v31 }
 0x290   : > { %968 = vmatmul.mubr.msk.f32.vlgmr.msra.gmra.mxu1 %vm453_vm2, %v356_v17 }
 0x350   : > { %v969_v33 = vpop.f32.mrf.mxu1 }
 0x351   : > { %v707_v34 = vadd.f32 %v969_v33, %v875_v32 }
 0x352   : > { %v701_v35 = vpop.f32.mrf.mxu1 }
 0x353   : > { %v711_v36 = vmax.f32 %v707_v34, 0.0  ;;  %v702_v37 = vadd.f32 %v875_v32, %v701_v35 }
 0x355   : > { %713 = vst [vmem:[%s334_s15 + $0x8] sm:$0xff] %v711_v36  ;;  %v710_v38 = vmax.f32 %v702_v37, 0.0 }
 0x357   : > { %712 = vst [vmem:[%s334_s15] sm:$0xff] %v710_v38 }
 0x358   : > { %1061 = shalt.err (!%p1058_p0)
}
 0x359   : > { %s1062_s13 = scalar_lea.hbm %s1316_s12, 256  ;;  %s1066_s14 = scalar_lea.hbm %s1365_s6, 512 }
 0x35a   : > { %p1063_p2 = scmp.ne.s32.totalorder %s1316_s12, %s1062_s13  ;;  %p1067_p3 = scmp.lt.s32.totalorder %s1316_s12, %s1365_s6 }
 0x35b   : > { %p1068_p6 = scmp.lt.s32.totalorder %s1066_s14, %s1062_s13 }
 0x35c   : > { %p1064_p9 = pnand %p1063_p2, %p1374_p13 }
 0x35d   : > { %p1069_p11 = por %p1068_p6, %p1067_p3 }
 0x35e   : > { %p1065_p1 = pneg %p1064_p9 }
 0x360   : > { %p1070_p12 = pnand %p1069_p11, %p1065_p1 }
 0x362   : > { %1073 = shalt.err (!%p1070_p12)
}
 0x363   : > { %s1118_s26 = smov 128   ;;  %s1119_s28 = smov 8  }
 0x364   : > { %972 = dma.vmem_to_hbm [thread:$0]  (%p1374_p13), %s1311_s8, 256, %s1316_s12, %s715_s16, %s1118_s26, %s1118_s26, %s1119_s28  }
 0x365 PF: > { %s743_s7 = sand.u32 1, %s1100_s21   ;;  %p1375_p4 = scmp.ne.s32.totalorder %s1371_s10, 0 }
 0x366   : > { %p1376_p5 = scmp.ge.s32.totalorder %s1112_s24, 2  ;;  %s744_s25 = scalar_lea.sflag [#allocation4], %s743_s7 }
 0x368   : > { %p979_p7 = pnand %p1376_p5, %p1375_p4 }
 0x36a   : > { %p980_p8 = pneg %p979_p7 }
 0x36c   : > { %1095 = dma.done.wait (%p980_p8), %s744_s25, 256  }
 0x36d   : > { %1097 = vsyncadd (%p980_p8), %s744_s25, 4294967040  ;;  %p19_p10 = scmp.ge.s32.totalorder %s1180_s27, 4   ;;  %s1377_s21 = smov %s1104_s22 }
 0x36e   : > { %s1378_s22 = smov %s1108_s23  ;;  %s1379_s23 = smov %s1192_s30 }
 0x36f   : > { %s1380_s24 = smov %s1180_s27  ;;  %21 = sbr.rel (!%p19_p10) target bundleno = 5 (0x5), region = 104 }
 0x374   :  { %749 = vsyncpa [#allocation3], 1 }
 0x375   :  { %751 = vsyncpa [#allocation3 + $0x1], 1 }
 0x376   :  { %752 = vsyncpa [#allocation4], 1 }
 0x377   :  { %754 = vsyncpa [#allocation4 + $0x1], 1 }

</bundles_post_ra>
